<compile_context>
chip_gen: v7x
topology: tpu7x:2x2x1
jax: 0.10.0
libtpu: 0.0.40
codegen_flags: <defaults>
</compile_context>

<pallas_src>
import math

import jax
import jax.numpy as jnp
from jax.experimental import pallas as pl
from jax.experimental.pallas import tpu as pltpu


def _seq_sum_kernel(x_ref, out_ref):
    # x_ref:   (TB, TS, Hp) block of the lane-packed input, native dtype.
    # out_ref: (TB, Hp) f32 block; same block across the sequence grid axis, so it
    #          stays VMEM-resident and acts as the accumulator.
    @pl.when(pl.program_id(1) == 0)
    def _():
        out_ref[...] = jnp.zeros_like(out_ref)

    # Sublane-axis reduction (XLU slot); accumulate in f32 regardless of input dtype.
    out_ref[...] += jnp.sum(x_ref[...], axis=1, dtype=jnp.float32)


def _pad_to(n, m):
    return -(-n // m) * m


def _sublane_tile(itemsize):
    # f32 -> 8, bf16/f16 -> 16, int8/fp8 -> 32 sublanes per vreg tile.
    return {4: 8, 2: 16, 1: 32}.get(itemsize, 8)


def _lane_pack_factor(S, H):
    """Fold k sequence steps into the lane axis so the lane width k*H is a multiple
    of 128 (lane-dense vregs, unmasked stores).  k must divide S so the
    (B, S, H) -> (B, S//k, k*H) reshape is a free row-major regrouping."""
    if H % 128 == 0:
        return 1
    k = 128 // math.gcd(H, 128)
    return k if S % k == 0 else 1


def _step_vmem_bytes(tb, ts, hp, itemsize):
    """Padded per-grid-step VMEM footprint: double-buffered input block +
    double-buffered f32 output block (the kernel has no other intermediates)."""
    sub_in = _sublane_tile(itemsize)
    hp_pad = _pad_to(hp, 128)
    x_block = tb * _pad_to(ts, sub_in) * hp_pad * itemsize
    out_block = _pad_to(tb, 8) * hp_pad * 4
    return 2 * x_block + 2 * out_block


def _pick_tiles(B, Sp, Hp, itemsize, *, target_steps=4, budget_bytes=8 << 20):
    """Pick (TB, TS) such that:
       * TB divides B with TB == B or TB % 8 == 0 (legal output sublane extent),
       * TS divides Sp with TS == Sp or TS % sublane_tile == 0,
       * the padded double-buffered per-step footprint fits `budget_bytes`
         (conservative for v7x's 64 MiB VMEM and v5e's 16 MiB default scoped limit),
       * the batch ("parallel") grid axis gets >= target_steps steps when the
         problem is big enough (DMA/compute overlap + v7x two-TensorCore sharding);
         otherwise the fewest steps win (per-step overhead ~0.35 us)."""
    sub_in = _sublane_tile(itemsize)
    tb_cands = [d for d in range(B, 0, -1)
                if B % d == 0 and (d == B or d % 8 == 0)]
    ts_cands = [d for d in range(Sp, 0, -1)
                if Sp % d == 0 and (d == Sp or d % sub_in == 0)]
    tb_min = tb_cands[-1]

    # Keep as much of the sequence resident per step as the budget allows
    # (fewer accumulator passes); checked against the smallest legal batch tile.
    ts = next((t for t in ts_cands
               if _step_vmem_bytes(tb_min, t, Hp, itemsize) <= budget_bytes),
              ts_cands[-1])

    fitting = [t for t in tb_cands
               if _step_vmem_bytes(t, ts, Hp, itemsize) <= budget_bytes]
    if not fitting:
        fitting = [tb_min]
    for want in (target_steps, 2):
        for tb in fitting:                      # largest first
            if B // tb >= want:
                return tb, ts
    return fitting[0], ts                       # problem too small to split B


def attention_forward(x, w_dense, b_dense, w_u, b_u):
    """Forward pass of the HAN Attention module.

    The attention parameters are accepted to mirror the module, but because
    F.softmax over the size-1 score axis yields alpha == 1.0 exactly for every
    finite input, they never influence the output; the kernel computes the
    (identical) x.sum(dim=1) directly.  (Only NaN inputs would propagate
    differently through the dropped path.)
    """
    del w_dense, b_dense, w_u, b_u   # dead path: alpha == 1.0 exactly (see docstring)

    B, S, H = x.shape
    itemsize = x.dtype.itemsize

    # Lane packing: free row-major reshape folding k sequence steps into lanes.
    k = _lane_pack_factor(S, H)
    Sp, Hp = S // k, H * k
    x_packed = x.reshape(B, Sp, Hp)

    tb, ts = _pick_tiles(B, Sp, Hp, itemsize)
    grid = (B // tb, Sp // ts)

    step_bytes = _step_vmem_bytes(tb, ts, Hp, itemsize)
    vmem_limit = int(min(max(3 * step_bytes, 16 << 20), 32 << 20))

    out_packed = pl.pallas_call(
        _seq_sum_kernel,
        out_shape=jax.ShapeDtypeStruct((B, Hp), jnp.float32),
        grid_spec=pltpu.PrefetchScalarGridSpec(
            num_scalar_prefetch=0,
            grid=grid,
            in_specs=[pl.BlockSpec((tb, ts, Hp), lambda b, s: (b, s, 0))],
            out_specs=pl.BlockSpec((tb, Hp), lambda b, s: (b, 0)),
        ),
        compiler_params=pltpu.CompilerParams(
            dimension_semantics=("parallel", "arbitrary"),
            vmem_limit_bytes=vmem_limit,
        ),
    )(x_packed)

    # Combine the k lane-packed partial sums (tiny (B, k, H) f32 array) and cast
    # back to the module's output dtype.
    out = out_packed if k == 1 else out_packed.reshape(B, k, H).sum(axis=1)
    return out.astype(x.dtype)


def attention_ref(x, w_dense, b_dense, w_u, b_u):
    # Pure-JAX reference mirroring the PyTorch forward exactly (dead path included).
    B, S, H = x.shape
    x2 = x.reshape(-1, H)
    v = jnp.tanh(x2 @ w_dense.T + b_dense)
    score = v @ w_u.T + b_u                    # (B*S, 1)
    alpha = jax.nn.softmax(score, axis=1)      # softmax over size-1 axis -> ones
    return (alpha.reshape(B, S, 1) * x).sum(axis=1)


if __name__ == "__main__":
    key = jax.random.PRNGKey(0)
    B, S, H, A = 2, 8, 32, 16   # batch, seq_len, hidden_dim, attention_dim

    k1, k2, k3, k4, k5 = jax.random.split(key, 5)
    x = jax.random.normal(k1, (B, S, H), jnp.float32)

    # Deterministic init mimicking nn.Linear's uniform(-1/sqrt(fan_in), ...)
    bd_bound = 1.0 / (H ** 0.5)
    w_dense = jax.random.uniform(k2, (A, H), jnp.float32, -bd_bound, bd_bound)
    b_dense = jax.random.uniform(k3, (A,), jnp.float32, -bd_bound, bd_bound)
    bu_bound = 1.0 / (A ** 0.5)
    w_u = jax.random.uniform(k4, (1, A), jnp.float32, -bu_bound, bu_bound)
    b_u = jax.random.uniform(k5, (1,), jnp.float32, -bu_bound, bu_bound)

    out = attention_forward(x, w_dense, b_dense, w_u, b_u)
    jax.block_until_ready(out)

    ref = attention_ref(x, w_dense, b_dense, w_u, b_u)
    assert out.shape == (B, H), out.shape
    assert jnp.allclose(out, ref, atol=1e-5, rtol=1e-5), "mismatch vs reference"
    print("KERNEL_OK")
</pallas_src>

<mosaic_0001>
module attributes {stable_mosaic.version = 11 : i64} {
  func.func @_seq_sum_kernel(%arg0: i32, %arg1: i32, %arg2: memref<2x2x128xf32, #tpu.memory_space<vmem>>, %arg3: memref<2x128xf32, #tpu.memory_space<vmem>>) attributes {dimension_semantics = [#tpu.dimension_semantics<parallel>, #tpu.dimension_semantics<arbitrary>], iteration_bounds = array<i64: 1, 1>, scalar_prefetch = 0 : i64, scratch_operands = 0 : i64, tpu.core_type = #tpu.core_type<tc>, window_params = [{transform_indices = @transform_0, window_bounds = array<i64: 2, 2, 128>}, {transform_indices = @transform_1, window_bounds = array<i64: 2, 128>}]} {
    %c0_i32 = arith.constant 0 : i32
    %0 = arith.cmpi eq, %arg1, %c0_i32 : i32
    %1 = arith.extui %0 : i1 to i32
    %c0_i32_0 = arith.constant 0 : i32
    %2 = arith.cmpi ne, %1, %c0_i32_0 : i32
    scf.if %2 {
      %cst_7 = arith.constant 0.000000e+00 : f32
      %8 = vector.broadcast %cst_7 : f32 to vector<2x128xf32>
      %c0_8 = arith.constant 0 : index
      %c0_9 = arith.constant 0 : index
      %9 = vector.load %arg3[%c0_8, %c0_9] : memref<2x128xf32, #tpu.memory_space<vmem>>, vector<2x128xf32>
      tpu.vector_store %arg3[%c0_8, %c0_9], %8 {strides = array<i32>} : memref<2x128xf32, #tpu.memory_space<vmem>>, vector<2x128xf32>,
    } else {
    }
    %c0 = arith.constant 0 : index
    %c0_1 = arith.constant 0 : index
    %3 = vector.load %arg3[%c0, %c0_1] : memref<2x128xf32, #tpu.memory_space<vmem>>, vector<2x128xf32>
    %c0_2 = arith.constant 0 : index
    %c0_3 = arith.constant 0 : index
    %c0_4 = arith.constant 0 : index
    %4 = vector.load %arg2[%c0_2, %c0_3, %c0_4] : memref<2x2x128xf32, #tpu.memory_space<vmem>>, vector<2x2x128xf32>
    %cst = arith.constant dense<0.000000e+00> : vector<2x128xf32>
    %5 = vector.multi_reduction <add>, %4, %cst [1] : vector<2x2x128xf32> to vector<2x128xf32>
    %6 = arith.addf %3, %5 : vector<2x128xf32>
    %c0_5 = arith.constant 0 : index
    %c0_6 = arith.constant 0 : index
    %7 = vector.load %arg3[%c0_5, %c0_6] : memref<2x128xf32, #tpu.memory_space<vmem>>, vector<2x128xf32>
    tpu.vector_store %arg3[%c0_5, %c0_6], %6 {strides = array<i32>} : memref<2x128xf32, #tpu.memory_space<vmem>>, vector<2x128xf32>,
    return
  }
  func.func @transform_0(%arg0: i32, %arg1: i32) -> (i32, i32, i32) {
    %c0_i32 = arith.constant 0 : i32
    %c0_i32_0 = arith.constant 0 : i32
    return %arg0, %arg1, %c0_i32 : i32, i32, i32
  }
  func.func @transform_1(%arg0: i32, %arg1: i32) -> (i32, i32) {
    %c0_i32 = arith.constant 0 : i32
    %c0_i32_0 = arith.constant 0 : i32
    return %arg0, %c0_i32 : i32, i32
  }
}

</mosaic_0001>

<bundles_post_ra>
// kernel: tpu_custom_call.1
= control target key start
LH: loop header
LB: loop body
LE: loop exit
PB: predicated region body
PF: predicated region fallthrough
CT: control target
= control target key end

     0   :  { %6 = vsyncpa [#allocation3], 0  ;;  %s160_s0 = inlined_call_operand.hbm [shape: f32[2,2,128], index: 0, kind: input, shape index: {}]   ;;  %s161_s1 = inlined_call_operand.hbm [shape: f32[2,128], index: 1, kind: output, shape index: {}]  }
   0x1   :  { %7 = vsyncpa [#allocation4], 0  ;;  %s121_s6 = smov [#allocation2]   ;;  %s73_s10 = scalar_lea.hbm %s160_s0, 64 }
   0x2   :  { %s13_s7 = sshll.u32 %s121_s6, 4  ;;  %p74_p0 = scmp.ne.s32.totalorder %s160_s0, %s73_s10  ;;  %s14_s7 = int_to_ptr.vmem [resolvable:$true] %s13_s7 }
   0x3   :  { %p77_p1 = scmp.lt.u32.totalorder %s73_s10, %s160_s0 }
   0x5   :  { %p79_p2 = pnand %p77_p1, %p74_p0 }
   0x7   :  { %82 = shalt.err (!%p79_p2)
}
   0x8   :  { %s83_s15 = scalar_lea.vmem %s14_s7, 64  ;;  %p88_p4 = scmp.lt.s32.totalorder %s14_s7, %s14_s7 }
   0x9   :  { %p84_p3 = scmp.ne.s32.totalorder %s14_s7, %s83_s15  ;;  %p89_p5 = scmp.lt.s32.totalorder %s83_s15, %s83_s15 }
   0xb   :  { %p90_p6 = por %p89_p5, %p88_p4 }
   0xd   :  { %p91_p7 = pnand %p90_p6, %p84_p3 }
   0xf   :  { %94 = shalt.err (!%p91_p7)
}
  0x10   :  { %s122_s16 = smov 32   ;;  %s123_s17 = smov 2  }
  0x11   :  { %19 = dma.hbm_to_vmem [thread:$0]  %s160_s0, 64, %s14_s7, [#allocation3], %s122_s16, %s122_s16, %s123_s17  }
  0x12   :  { %117 = dma.done.wait [#allocation3], 64  }
  0x13   :  { %118 = vsyncadd [#allocation3], 4294967232  ;;  %v124_v0 = vmov 0.0   ;;  %vm31_vm0 = vcmask 1041408   ;;  %v29_v1 = vld [vmem:[#allocation2] sm:$0x3] }
  0x14   :  { %27 = vst [vmem:[#allocation5] sm:$0x3] %v124_v0  ;;  %v30_v2 = vld [vmem:[#allocation2 + $0x2] sm:$0x3]  ;;  %v32_v3 = vsel %vm31_vm0, %v29_v1, 0.0  ;;  %vm48_vm1 = vcmask 1041409  }
  0x15   :  { %v39_v4 = vsel %vm31_vm0, %v30_v2, 0.0  ;;  %v33_v5 = vrot.slane %v32_v3, 4  ;;  %s125_s0 = smov [#allocation5]  }
  0x16   :  { %v40_v6 = vrot.slane %v39_v4, 4  ;;  %s59_s20 = sshll.u32 %s125_s0, 4  ;;  %s60_s20 = int_to_ptr.vmem [resolvable:$true] %s59_s20 }
  0x17   :  { %v34_v7 = vadd.f32 %v33_v5, %v32_v3  ;;  %s95_s21 = scalar_lea.vmem %s60_s20, 32  ;;  %p100_p9 = scmp.lt.s32.totalorder %s60_s20, %s60_s20 }
  0x18   :  { %v41_v8 = vadd.f32 %v40_v6, %v39_v4  ;;  %p96_p8 = scmp.ne.s32.totalorder %s60_s20, %s95_s21  ;;  %p101_p10 = scmp.lt.s32.totalorder %s95_s21, %s95_s21 }
  0x19   :  { %v35_v9 = vrot.slane %v34_v7, 2 }
  0x1a   :  { %v42_v10 = vrot.slane %v41_v8, 2  ;;  %p102_p11 = por %p101_p10, %p100_p9 }
  0x1b   :  { %v36_v11 = vadd.f32 %v35_v9, %v34_v7  ;;  %v28_v15 = vld [vmem:[#allocation5] sm:$0x3] }
  0x1c   :  { %v43_v12 = vadd.f32 %v42_v10, %v41_v8  ;;  %p103_p12 = pnand %p102_p11, %p96_p8 }
  0x1d   :  { %v37_v13 = vrot.slane %v36_v11, 1 }
  0x1e   :  { %v44_v14 = vrot.slane %v43_v12, 1 }
  0x1f   :  { %v38_v16 = vadd.f32 %v37_v13, %v36_v11 }
  0x20   :  { %v45_v17 = vadd.f32 %v44_v14, %v43_v12 }
  0x22   :  { %v49_v18 = vsel %vm48_vm1, %v45_v17, %v38_v16 }
  0x23   :  { %v51_v19 = vadd.f32 %v49_v18, %v28_v15 }
  0x25   :  { %52 = vst [vmem:[#allocation5] sm:$0x3] %v51_v19 }
  0x26   :  { %106 = shalt.err (!%p103_p12)
}
  0x27   :  { %s107_s24 = scalar_lea.hbm %s161_s1, 32 }
  0x28   :  { %p108_p13 = scmp.ne.s32.totalorder %s161_s1, %s107_s24  ;;  %p111_p0 = scmp.lt.u32.totalorder %s107_s24, %s161_s1 }
  0x2a   :  { %p113_p1 = pnand %p111_p0, %p108_p13 }
  0x2c   :  { %116 = shalt.err (!%p113_p1)
}
  0x2d   :  { %62 = dma.vmem_to_hbm [thread:$0]  %s60_s20, 32, %s161_s1, [#allocation4]  }
  0x2e   :  { %119 = dma.done.wait [#allocation4], 32  }
  0x2f   :  { %120 = vsyncadd [#allocation4], 4294967264 }
  0x30   :  { %66 = vsyncpa [#allocation3], 1 }
  0x31   :  { %67 = vsyncpa [#allocation4], 1 }

</bundles_post_ra>
